<compile_context>
chip_gen: v7x
topology: tpu7x:2x2x1
jax: 0.10.0
libtpu: 0.0.40
codegen_flags: <defaults>
</compile_context>

<pallas_src>
import jax
import jax.numpy as jnp
from jax.experimental import pallas as pl
from jax.experimental.pallas import tpu as pltpu


def _round_up(x, m):
    return (x + m - 1) // m * m


def _vmem_estimate_bytes(T, BB, H, D):
    """Rough VMEM footprint: double-buffered BlockSpec tiles + scratch (f32)."""
    f32 = 4
    tiles = 2 * (T * BB * D       # x chunk
                 + T * BB * H     # res chunk
                 + D * H          # W_in^T
                 + H              # folded bias
                 + H * H          # W_h^T
                 + BB * H) * f32  # h0 block
    scratch = (BB * H + T * BB * H) * f32   # carried h + staged projection
    return tiles + scratch


def _rnn_kernel(x_ref, win_ref, b_ref, wh_ref, h0_ref, res_ref,
                h_scratch, xp_scratch):
    """One grid step = one (batch_block, time_chunk) tile of the recurrence.

    x_ref   : (T, BB, Dp)  raw inputs for this chunk
    win_ref : (Dp, H)      W_in^T (padded)
    b_ref   : (1, H)       folded bias b_in + b_h (padded)
    wh_ref  : (H, H)       W_h^T (padded)
    h0_ref  : (BB, H)      initial hidden state for this batch block
    res_ref : (T, BB, H)   output: hidden state BEFORE the update at each step
    h_scratch : (BB, H)    hidden state carried across time chunks
    xp_scratch: (T, BB, H) staged input projection for this chunk

    NOTE: the h_scratch carry is only valid because the time axis is the LAST
    (fastest-varying) grid dimension and is marked 'arbitrary'; for each batch
    block all of its time chunks run back-to-back on a single core. Do not
    reorder the grid axes or mark the time axis 'parallel'.
    """
    c = pl.program_id(1)  # time-chunk index (carried, 'arbitrary' axis)

    @pl.when(c == 0)
    def _():
        h_scratch[...] = h0_ref[...]

    T, BB, Dp = x_ref.shape
    H = res_ref.shape[-1]

    # Chunk-level input projection (independent of the recurrence): a single
    # (T*BB, Dp) @ (Dp, H) MXU matmul with the folded bias. Staged in VMEM scratch
    # so it is not a large live value across the unrolled loop below.
    xp_scratch[...] = (
        jnp.dot(x_ref[...].reshape(T * BB, Dp), win_ref[...],
                preferred_element_type=jnp.float32)
        + b_ref[...]
    ).reshape(T, BB, H)

    # Serial recurrence, statically unrolled: h stays in vregs, each res store is a
    # full lane-dense (BB, H) tile. wh_ref is read at each dot (RHS tiles stream
    # from VMEM) rather than hoisted into a resident (H,H) value.
    h = h_scratch[...]
    for t in range(T):
        res_ref[t] = h
        h = jnp.tanh(
            jnp.dot(h.astype(wh_ref.dtype), wh_ref[...],
                    preferred_element_type=jnp.float32)
            + xp_scratch[t]
        )

    h_scratch[...] = h  # carry to the next time chunk


def rnn_forward(x, h0, w_in, b_in, w_h, b_h, w_out, b_out, *,
                time_chunk=32, batch_block=None,
                recurrent_dtype=jnp.float32,
                vmem_budget_bytes=40 * 2**20):
    """x: (L, B, D); h0: (B, H). Weights in PyTorch (out, in) convention.

    Returns (res, y) with res: (L, B, latent), y: (B, dimout), matching the
    PyTorch forward (in float32).
    """
    length, batch, dim = x.shape
    latent = h0.shape[1]

    f32 = jnp.float32
    x = x.astype(f32)
    h0 = h0.astype(f32)
    w_in = w_in.astype(f32)
    b_in = b_in.astype(f32)
    w_h = w_h.astype(f32)
    b_h = b_h.astype(f32)
    w_out = w_out.astype(f32)
    b_out = b_out.astype(f32)

    # ---- Padded, lane/sublane/MXU-friendly sizes.
    H = _round_up(latent, 128)    # hidden (lane dim)
    Dp = _round_up(dim, 128)      # input dim (lane dim of x, contraction of W_in^T)
    B8 = _round_up(batch, 8)

    # Batch blocking: prefer >= 2 blocks so the v7x second TensorCore gets work,
    # then make each block as large as possible for MXU row utilization.
    # 256 rows matches the v6e/v7x MXU; cap at 128 when tuning specifically for v5e.
    MAX_BB = 256
    if batch_block is None:
        if B8 >= 16:
            bb = min(_round_up(-(-B8 // 2), 8), MAX_BB)
        else:
            bb = B8
    else:
        bb = batch_block
    assert bb % 8 == 0
    B = _round_up(B8, bb)

    # Time chunking: large chunks amortize per-grid-step overhead and grow DMA
    # tiles; shrink to keep the VMEM estimate under budget (v7x: 64 MiB total).
    T = max(1, min(time_chunk, length))
    while T > 1 and _vmem_estimate_bytes(T, bb, H, Dp) > vmem_budget_bytes:
        T //= 2
    L = _round_up(length, T)

    # ---- Pad operands (zero-padded weight rows/cols keep padded lanes of h at 0,
    # so they never feed back into valid lanes; padded rows/steps are sliced off).
    x_p = jnp.pad(x, ((0, L - length), (0, B - batch), (0, Dp - dim)))
    win_p = jnp.pad(w_in.T, ((0, Dp - dim), (0, H - latent)))
    b_p = jnp.pad(b_in + b_h, (0, H - latent)).reshape(1, H)
    wh_p = jnp.pad(w_h.T, ((0, H - latent), (0, H - latent))).astype(recurrent_dtype)
    h0_p = jnp.pad(h0, ((0, B - batch), (0, H - latent)))

    grid = (B // bb, L // T)
    vmem_limit = int(min(48 * 2**20,
                         max(1.25 * _vmem_estimate_bytes(T, bb, H, Dp), 32 * 2**20)))

    res_p = pl.pallas_call(
        _rnn_kernel,
        out_shape=jax.ShapeDtypeStruct((L, B, H), f32),
        grid_spec=pltpu.PrefetchScalarGridSpec(
            num_scalar_prefetch=0,
            grid=grid,
            in_specs=[
                pl.BlockSpec((T, bb, Dp), lambda b, c: (c, b, 0)),  # x chunk
                pl.BlockSpec((Dp, H), lambda b, c: (0, 0)),         # W_in^T
                pl.BlockSpec((1, H), lambda b, c: (0, 0)),          # folded bias
                pl.BlockSpec((H, H), lambda b, c: (0, 0)),          # W_h^T
                pl.BlockSpec((bb, H), lambda b, c: (b, 0)),         # h0 block
            ],
            out_specs=pl.BlockSpec((T, bb, H), lambda b, c: (c, b, 0)),
            scratch_shapes=[
                pltpu.VMEM((bb, H), f32),      # carried hidden state
                pltpu.VMEM((T, bb, H), f32),   # staged input projection
            ],
        ),
        compiler_params=pltpu.CompilerParams(
            # Batch blocks are independent ('parallel' -> shardable across the two
            # v7x TensorCores); the time axis is a true recurrence and MUST stay
            # the last grid axis, marked 'arbitrary', for the h_scratch carry.
            dimension_semantics=("parallel", "arbitrary"),
            vmem_limit_bytes=vmem_limit,
        ),
    )(x_p, win_p, b_p, wh_p, h0_p)

    # Slice the padding back off.
    res = res_p[:length, :batch, :latent]

    # Output head outside the kernel (tiny, one-shot): y = hidden_out(res[-1]).
    y = res[-1] @ w_out.T + b_out
    return res, y


def rnn_reference(x, h0, w_in, b_in, w_h, b_h, w_out, b_out):
    """Pure-JAX (float32) reference mirroring the PyTorch forward."""
    length = x.shape[0]
    res = []
    h = h0
    for t in range(length):
        res.append(h)
        h = jnp.tanh(x[t] @ w_in.T + b_in + h @ w_h.T + b_h)
    res = jnp.stack(res, axis=0)
    y = res[-1] @ w_out.T + b_out
    return res, y


def _make_inputs(key, length, batch, dim, latent, dimout):
    ks = jax.random.split(key, 8)
    x = jax.random.normal(ks[0], (length, batch, dim), dtype=jnp.float32)
    h0 = jax.random.normal(ks[1], (batch, latent), dtype=jnp.float32)
    # nn.Linear parameter shapes: weight (out, in), bias (out,)
    w_in = jax.random.normal(ks[2], (latent, dim), dtype=jnp.float32) * 0.1
    b_in = jax.random.normal(ks[3], (latent,), dtype=jnp.float32) * 0.1
    w_h = jax.random.normal(ks[4], (latent, latent), dtype=jnp.float32) * 0.1
    b_h = jax.random.normal(ks[5], (latent,), dtype=jnp.float32) * 0.1
    w_out = jax.random.normal(ks[6], (dimout, latent), dtype=jnp.float32) * 0.1
    b_out = jax.random.normal(ks[7], (dimout,), dtype=jnp.float32) * 0.1
    return x, h0, w_in, b_in, w_h, b_h, w_out, b_out


if __name__ == "__main__":
    k1, k2 = jax.random.split(jax.random.PRNGKey(0))

    # Case 1: small shapes from the module signature. time_chunk=4 -> grid=(1, 2),
    # exercising the hidden-state carry across time chunks.
    length, batch, dim, latent, dimout = 8, 2, 4, 32, 3
    args = _make_inputs(k1, length, batch, dim, latent, dimout)
    res, y = rnn_forward(*args, time_chunk=4)
    jax.block_until_ready((res, y))
    res_ref, y_ref = rnn_reference(*args)
    assert res.shape == (length, batch, latent) and y.shape == (batch, dimout)
    assert jnp.allclose(res, res_ref, atol=1e-4, rtol=1e-4)
    assert jnp.allclose(y, y_ref, atol=1e-4, rtol=1e-4)

    # Case 2: non-multiple batch/latent/length -> exercises all padding paths and
    # two batch blocks on the 'parallel' axis (grid = (2, 3)).
    length, batch, dim, latent, dimout = 9, 10, 6, 40, 5
    args = _make_inputs(k2, length, batch, dim, latent, dimout)
    res, y = rnn_forward(*args, time_chunk=4)
    jax.block_until_ready((res, y))
    res_ref, y_ref = rnn_reference(*args)
    assert res.shape == (length, batch, latent) and y.shape == (batch, dimout)
    assert jnp.allclose(res, res_ref, atol=1e-4, rtol=1e-4)
    assert jnp.allclose(y, y_ref, atol=1e-4, rtol=1e-4)

    print("KERNEL_OK")
</pallas_src>

<mosaic_0001>
module attributes {stable_mosaic.version = 11 : i64} {
  func.func @_rnn_kernel(%arg0: i32, %arg1: i32, %arg2: memref<4x8x128xf32, #tpu.memory_space<vmem>>, %arg3: memref<128x128xf32, #tpu.memory_space<vmem>>, %arg4: memref<1x128xf32, #tpu.memory_space<vmem>>, %arg5: memref<128x128xf32, #tpu.memory_space<vmem>>, %arg6: memref<8x128xf32, #tpu.memory_space<vmem>>, %arg7: memref<4x8x128xf32, #tpu.memory_space<vmem>>, %arg8: memref<8x128xf32, #tpu.memory_space<vmem>>, %arg9: memref<4x8x128xf32, #tpu.memory_space<vmem>>) attributes {dimension_semantics = [#tpu.dimension_semantics<parallel>, #tpu.dimension_semantics<arbitrary>], iteration_bounds = array<i64: 1, 2>, scalar_prefetch = 0 : i64, scratch_operands = 2 : i64, tpu.core_type = #tpu.core_type<tc>, window_params = [{transform_indices = @transform_0, window_bounds = array<i64: 4, 8, 128>}, {pipeline_mode = #tpu.pipeline_mode<synchronous>, transform_indices = @transform_1, window_bounds = array<i64: 128, 128>}, {pipeline_mode = #tpu.pipeline_mode<synchronous>, transform_indices = @transform_2, window_bounds = array<i64: 1, 128>}, {pipeline_mode = #tpu.pipeline_mode<synchronous>, transform_indices = @transform_3, window_bounds = array<i64: 128, 128>}, {transform_indices = @transform_4, window_bounds = array<i64: 8, 128>}, {transform_indices = @transform_5, window_bounds = array<i64: 4, 8, 128>}]} {
    %c0_i32 = arith.constant 0 : i32
    %0 = arith.cmpi eq, %arg1, %c0_i32 : i32
    %1 = arith.extui %0 : i1 to i32
    %c0_i32_0 = arith.constant 0 : i32
    %2 = arith.cmpi ne, %1, %c0_i32_0 : i32
    scf.if %2 {
      %c0_47 = arith.constant 0 : index
      %c0_48 = arith.constant 0 : index
      %50 = vector.load %arg6[%c0_47, %c0_48] : memref<8x128xf32, #tpu.memory_space<vmem>>, vector<8x128xf32>
      %c0_49 = arith.constant 0 : index
      %c0_50 = arith.constant 0 : index
      %51 = vector.load %arg8[%c0_49, %c0_50] : memref<8x128xf32, #tpu.memory_space<vmem>>, vector<8x128xf32>
      tpu.vector_store %arg8[%c0_49, %c0_50], %50 {strides = array<i32>} : memref<8x128xf32, #tpu.memory_space<vmem>>, vector<8x128xf32>,
    } else {
    }
    %c0 = arith.constant 0 : index
    %c0_1 = arith.constant 0 : index
    %c0_2 = arith.constant 0 : index
    %3 = vector.load %arg2[%c0, %c0_1, %c0_2] : memref<4x8x128xf32, #tpu.memory_space<vmem>>, vector<4x8x128xf32>
    %4 = vector.shape_cast %3 : vector<4x8x128xf32> to vector<32x128xf32>
    %c0_3 = arith.constant 0 : index
    %c0_4 = arith.constant 0 : index
    %5 = vector.load %arg3[%c0_3, %c0_4] : memref<128x128xf32, #tpu.memory_space<vmem>>, vector<128x128xf32>
    %cst = arith.constant dense<0.000000e+00> : vector<32x128xf32>
    %6 = tpu.matmul %4, %5, %cst {dimension_numbers = #tpu.dot_dimension_numbers<[1], [0], [0], [1], [0, 0, 1, 1], [], []>} : vector<32x128xf32>, vector<128x128xf32>, vector<32x128xf32> -> vector<32x128xf32>
    %c0_5 = arith.constant 0 : index
    %c0_6 = arith.constant 0 : index
    %7 = vector.load %arg4[%c0_5, %c0_6] : memref<1x128xf32, #tpu.memory_space<vmem>>, vector<1x128xf32>
    %8 = vector.broadcast %7 : vector<1x128xf32> to vector<32x128xf32>
    %9 = arith.addf %6, %8 : vector<32x128xf32>
    %10 = vector.shape_cast %9 : vector<32x128xf32> to vector<4x8x128xf32>
    %c0_7 = arith.constant 0 : index
    %c0_8 = arith.constant 0 : index
    %c0_9 = arith.constant 0 : index
    %11 = vector.load %arg9[%c0_7, %c0_8, %c0_9] : memref<4x8x128xf32, #tpu.memory_space<vmem>>, vector<4x8x128xf32>
    tpu.vector_store %arg9[%c0_7, %c0_8, %c0_9], %10 {strides = array<i32>} : memref<4x8x128xf32, #tpu.memory_space<vmem>>, vector<4x8x128xf32>,
    %c0_10 = arith.constant 0 : index
    %c0_11 = arith.constant 0 : index
    %12 = vector.load %arg8[%c0_10, %c0_11] : memref<8x128xf32, #tpu.memory_space<vmem>>, vector<8x128xf32>
    %c0_12 = arith.constant 0 : index
    %c0_13 = arith.constant 0 : index
    %c0_14 = arith.constant 0 : index
    %13 = vector.load %arg7[%c0_12, %c0_13, %c0_14] : memref<4x8x128xf32, #tpu.memory_space<vmem>>, vector<1x8x128xf32>
    %14 = vector.shape_cast %13 : vector<1x8x128xf32> to vector<8x128xf32>
    %15 = vector.shape_cast %12 : vector<8x128xf32> to vector<1x8x128xf32>
    tpu.vector_store %arg7[%c0_12, %c0_13, %c0_14], %15 {strides = array<i32>} : memref<4x8x128xf32, #tpu.memory_space<vmem>>, vector<1x8x128xf32>,
    %c0_15 = arith.constant 0 : index
    %c0_16 = arith.constant 0 : index
    %16 = vector.load %arg5[%c0_15, %c0_16] : memref<128x128xf32, #tpu.memory_space<vmem>>, vector<128x128xf32>
    %cst_17 = arith.constant dense<0.000000e+00> : vector<8x128xf32>
    %17 = tpu.matmul %12, %16, %cst_17 {dimension_numbers = #tpu.dot_dimension_numbers<[1], [0], [0], [1], [0, 0, 1, 1], [], []>} : vector<8x128xf32>, vector<128x128xf32>, vector<8x128xf32> -> vector<8x128xf32>
    %c0_18 = arith.constant 0 : index
    %c0_19 = arith.constant 0 : index
    %c0_20 = arith.constant 0 : index
    %18 = vector.load %arg9[%c0_18, %c0_19, %c0_20] : memref<4x8x128xf32, #tpu.memory_space<vmem>>, vector<1x8x128xf32>
    %19 = vector.shape_cast %18 : vector<1x8x128xf32> to vector<8x128xf32>
    %20 = arith.addf %17, %19 : vector<8x128xf32>
    %21 = math.tanh %20 : vector<8x128xf32>
    %c1 = arith.constant 1 : index
    %c0_21 = arith.constant 0 : index
    %c0_22 = arith.constant 0 : index
    %22 = vector.load %arg7[%c1, %c0_21, %c0_22] : memref<4x8x128xf32, #tpu.memory_space<vmem>>, vector<1x8x128xf32>
    %23 = vector.shape_cast %22 : vector<1x8x128xf32> to vector<8x128xf32>
    %24 = vector.shape_cast %21 : vector<8x128xf32> to vector<1x8x128xf32>
    tpu.vector_store %arg7[%c1, %c0_21, %c0_22], %24 {strides = array<i32>} : memref<4x8x128xf32, #tpu.memory_space<vmem>>, vector<1x8x128xf32>,
    %c0_23 = arith.constant 0 : index
    %c0_24 = arith.constant 0 : index
    %25 = vector.load %arg5[%c0_23, %c0_24] : memref<128x128xf32, #tpu.memory_space<vmem>>, vector<128x128xf32>
    %cst_25 = arith.constant dense<0.000000e+00> : vector<8x128xf32>
    %26 = tpu.matmul %21, %25, %cst_25 {dimension_numbers = #tpu.dot_dimension_numbers<[1], [0], [0], [1], [0, 0, 1, 1], [], []>} : vector<8x128xf32>, vector<128x128xf32>, vector<8x128xf32> -> vector<8x128xf32>
    %c1_26 = arith.constant 1 : index
    %c0_27 = arith.constant 0 : index
    %c0_28 = arith.constant 0 : index
    %27 = vector.load %arg9[%c1_26, %c0_27, %c0_28] : memref<4x8x128xf32, #tpu.memory_space<vmem>>, vector<1x8x128xf32>
    %28 = vector.shape_cast %27 : vector<1x8x128xf32> to vector<8x128xf32>
    %29 = arith.addf %26, %28 : vector<8x128xf32>
    %30 = math.tanh %29 : vector<8x128xf32>
    %c2 = arith.constant 2 : index
    %c0_29 = arith.constant 0 : index
    %c0_30 = arith.constant 0 : index
    %31 = vector.load %arg7[%c2, %c0_29, %c0_30] : memref<4x8x128xf32, #tpu.memory_space<vmem>>, vector<1x8x128xf32>
    %32 = vector.shape_cast %31 : vector<1x8x128xf32> to vector<8x128xf32>
    %33 = vector.shape_cast %30 : vector<8x128xf32> to vector<1x8x128xf32>
    tpu.vector_store %arg7[%c2, %c0_29, %c0_30], %33 {strides = array<i32>} : memref<4x8x128xf32, #tpu.memory_space<vmem>>, vector<1x8x128xf32>,
    %c0_31 = arith.constant 0 : index
    %c0_32 = arith.constant 0 : index
    %34 = vector.load %arg5[%c0_31, %c0_32] : memref<128x128xf32, #tpu.memory_space<vmem>>, vector<128x128xf32>
    %cst_33 = arith.constant dense<0.000000e+00> : vector<8x128xf32>
    %35 = tpu.matmul %30, %34, %cst_33 {dimension_numbers = #tpu.dot_dimension_numbers<[1], [0], [0], [1], [0, 0, 1, 1], [], []>} : vector<8x128xf32>, vector<128x128xf32>, vector<8x128xf32> -> vector<8x128xf32>
    %c2_34 = arith.constant 2 : index
    %c0_35 = arith.constant 0 : index
    %c0_36 = arith.constant 0 : index
    %36 = vector.load %arg9[%c2_34, %c0_35, %c0_36] : memref<4x8x128xf32, #tpu.memory_space<vmem>>, vector<1x8x128xf32>
    %37 = vector.shape_cast %36 : vector<1x8x128xf32> to vector<8x128xf32>
    %38 = arith.addf %35, %37 : vector<8x128xf32>
    %39 = math.tanh %38 : vector<8x128xf32>
    %c3 = arith.constant 3 : index
    %c0_37 = arith.constant 0 : index
    %c0_38 = arith.constant 0 : index
    %40 = vector.load %arg7[%c3, %c0_37, %c0_38] : memref<4x8x128xf32, #tpu.memory_space<vmem>>, vector<1x8x128xf32>
    %41 = vector.shape_cast %40 : vector<1x8x128xf32> to vector<8x128xf32>
    %42 = vector.shape_cast %39 : vector<8x128xf32> to vector<1x8x128xf32>
    tpu.vector_store %arg7[%c3, %c0_37, %c0_38], %42 {strides = array<i32>} : memref<4x8x128xf32, #tpu.memory_space<vmem>>, vector<1x8x128xf32>,
    %c0_39 = arith.constant 0 : index
    %c0_40 = arith.constant 0 : index
    %43 = vector.load %arg5[%c0_39, %c0_40] : memref<128x128xf32, #tpu.memory_space<vmem>>, vector<128x128xf32>
    %cst_41 = arith.constant dense<0.000000e+00> : vector<8x128xf32>
    %44 = tpu.matmul %39, %43, %cst_41 {dimension_numbers = #tpu.dot_dimension_numbers<[1], [0], [0], [1], [0, 0, 1, 1], [], []>} : vector<8x128xf32>, vector<128x128xf32>, vector<8x128xf32> -> vector<8x128xf32>
    %c3_42 = arith.constant 3 : index
    %c0_43 = arith.constant 0 : index
    %c0_44 = arith.constant 0 : index
    %45 = vector.load %arg9[%c3_42, %c0_43, %c0_44] : memref<4x8x128xf32, #tpu.memory_space<vmem>>, vector<1x8x128xf32>
    %46 = vector.shape_cast %45 : vector<1x8x128xf32> to vector<8x128xf32>
    %47 = arith.addf %44, %46 : vector<8x128xf32>
    %48 = math.tanh %47 : vector<8x128xf32>
    %c0_45 = arith.constant 0 : index
    %c0_46 = arith.constant 0 : index
    %49 = vector.load %arg8[%c0_45, %c0_46] : memref<8x128xf32, #tpu.memory_space<vmem>>, vector<8x128xf32>
    tpu.vector_store %arg8[%c0_45, %c0_46], %48 {strides = array<i32>} : memref<8x128xf32, #tpu.memory_space<vmem>>, vector<8x128xf32>,
    return
  }
  func.func @transform_0(%arg0: i32, %arg1: i32) -> (i32, i32, i32) {
    %c0_i32 = arith.constant 0 : i32
    %c0_i32_0 = arith.constant 0 : i32
    return %arg1, %arg0, %c0_i32 : i32, i32, i32
  }
  func.func @transform_1(%arg0: i32, %arg1: i32) -> (i32, i32) {
    %c0_i32 = arith.constant 0 : i32
    %c0_i32_0 = arith.constant 0 : i32
    %c0_i32_1 = arith.constant 0 : i32
    return %c0_i32, %c0_i32_0 : i32, i32
  }
  func.func @transform_2(%arg0: i32, %arg1: i32) -> (i32, i32) {
    %c0_i32 = arith.constant 0 : i32
    %c0_i32_0 = arith.constant 0 : i32
    %c0_i32_1 = arith.constant 0 : i32
    return %c0_i32, %c0_i32_0 : i32, i32
  }
  func.func @transform_3(%arg0: i32, %arg1: i32) -> (i32, i32) {
    %c0_i32 = arith.constant 0 : i32
    %c0_i32_0 = arith.constant 0 : i32
    %c0_i32_1 = arith.constant 0 : i32
    return %c0_i32, %c0_i32_0 : i32, i32
  }
  func.func @transform_4(%arg0: i32, %arg1: i32) -> (i32, i32) {
    %c0_i32 = arith.constant 0 : i32
    %c0_i32_0 = arith.constant 0 : i32
    return %arg0, %c0_i32 : i32, i32
  }
  func.func @transform_5(%arg0: i32, %arg1: i32) -> (i32, i32, i32) {
    %c0_i32 = arith.constant 0 : i32
    %c0_i32_0 = arith.constant 0 : i32
    return %arg1, %arg0, %c0_i32 : i32, i32, i32
  }
}

</mosaic_0001>

<bundles_post_ra>
// kernel: tpu_custom_call.1
= control target key start
LH: loop header
LB: loop body
LE: loop exit
PB: predicated region body
PF: predicated region fallthrough
CT: control target
= control target key end

     0   :  { %10 = vsyncpa [#allocation5], 0  ;;  %s2040_s0 = inlined_call_operand.hbm [shape: f32[8,8,128], index: 0, kind: input, shape index: {}]   ;;  %s2041_s1 = inlined_call_operand.hbm [shape: f32[128,128], index: 1, kind: input, shape index: {}]   ;;  %s2042_s2 = inlined_call_operand.vmem [shape: f32[1,128], index: 2, kind: input, shape index: {}]   ;;  %s2043_s3 = inlined_call_operand.hbm [shape: f32[128,128], index: 3, kind: input, shape index: {}]   ;;  %s2044_s4 = inlined_call_operand.vmem [shape: f32[8,128], index: 4, kind: input, shape index: {}]   ;;  %s2045_s5 = inlined_call_operand.hbm [shape: f32[8,8,128], index: 5, kind: output, shape index: {}]  }
   0x1   :  { %12 = vsyncpa [#allocation5 + $0x1], 0 }
   0x2   :  { %13 = vsyncpa [#allocation8], 0 }
   0x3   :  { %14 = vsyncpa [#allocation6], 0 }
   0x4   :  { %16 = vsyncpa [#allocation6 + $0x1], 0  ;;  %s1662_s18 = smov 0   ;;  %s1664_s19 = smov 0  }
   0x5   :  { %s1666_s20 = smov 0   ;;  %s1668_s21 = smov 0  }
   0x6   :  { %s1670_s22 = smov 0   ;;  %s1672_s23 = smov 0  }
   0x7 LB: > { %s928_s24 = sadd.s32 4294967295, %s1619_s23   ;;  %s929_s25 = sadd.s32 4294967294, %s1619_s23   ;;  %s1619_s23 = sphi %s1672_s23, %s22_s23   ;;  %s1615_s22 = sphi %s1670_s22, %s2069_s22   ;;  %s1611_s21 = sphi %s1668_s21, %s2068_s21   ;;  %s1607_s20 = sphi %s1666_s20, %s2067_s20   ;;  %s1603_s19 = sphi %s1664_s19, %s2066_s19   ;;  %s1599_s18 = sphi %s1662_s18, %s2065_s18  }
   0x8   : > { %p56_p0 = scmp.ne.s32.totalorder %s1603_s19, %s1599_s18  ;;  %p1696_p1 = scmp.eq.s32.totalorder %s928_s24, 0 }
   0x9   : > { %p1700_p2 = scmp.eq.s32.totalorder %s928_s24, 1  ;;  %p177_p3 = scmp.eq.s32.totalorder %s929_s25, 1 }
   0xa   : > { %s2051_s26 = scalar_select %p1696_p1, 1, 0 }
   0xb   : > { %p1706_p4 = por %p1696_p1, %p56_p0  ;;  %p930_p5 = scmp.ge.s32.totalorder %s1619_s23, 1 }
   0xc   : > { %p1711_p6 = por %p177_p3, %p56_p0  ;;  %p184_p7 = scmp.lt.s32.totalorder %s1619_s23, 3 }
   0xd   : > { %s2053_s28 = scalar_select %p1706_p4, 1, 0 }
   0xe   : > { %s2054_s29 = scalar_select %p1711_p6, 1, 0 }
   0xf   : > { %p1716_p8 = pnand %p930_p5, %p184_p7  ;;  %s1621_s6 = smov [#allocation7]  }
  0x10   : > { %s196_s7 = sshll.u32 %s1621_s6, 4  ;;  %s1622_s9 = smov [#allocation9]   ;;  %s1720_s7 = int_to_ptr.vmem [resolvable:$true] %s196_s7 }
  0x11   : > { %p1361_p9 = pneg %p1716_p8  ;;  %s212_s10 = sshll.u32 %s1622_s9, 4  ;;  %s1731_s10 = int_to_ptr.vmem [resolvable:$true] %s212_s10 }
  0x12   : > { %s1447_s13 = scalar_lea.hbm %s2041_s1, 2048 }
  0x13   : > { %p1727_p11 = pnand %p1361_p9, %p1696_p1  ;;  %p1448_p12 = scmp.ne.s32.totalorder %s2041_s1, %s1447_s13 }
  0x14   : > { %p1454_p5 = scmp.lt.u32.totalorder %s1447_s13, %s2041_s1 }
  0x15   : > { %p1449_p13 = pneg %p1727_p11 }
  0x17   : > { %p1450_p0 = pnand %p1449_p13, %p1448_p12 }
  0x19   : > { %p1451_p3 = pneg %p1450_p0 }
  0x1b   : > { %p1456_p7 = pnand %p1454_p5, %p1451_p3 }
  0x1d   : > { %1459 = shalt.err (!%p1456_p7)
}
  0x1e   : > { %s1460_s24 = scalar_lea.vmem %s1720_s7, 2048  ;;  %p1468_p1 = scmp.lt.s32.totalorder %s1720_s7, %s1720_s7 }
  0x1f   : > { %p1461_p9 = scmp.ne.s32.totalorder %s1720_s7, %s1460_s24  ;;  %p1469_p12 = scmp.lt.s32.totalorder %s1460_s24, %s1460_s24 }
  0x21   : > { %p1463_p10 = pnand %p1461_p9, %p1449_p13  ;;  %p1470_p0 = por %p1469_p12, %p1468_p1 }
  0x23   : > { %p1464_p6 = pneg %p1463_p10 }
  0x25   : > { %p1471_p4 = pnand %p1470_p0, %p1464_p6 }
  0x27   : > { %1474 = shalt.err (!%p1471_p4)
}
  0x28   : > { %s2049_s25 = smov 128   ;;  %s1624_s6 = smov 8  }
  0x29   : > { %1364 = dma.hbm_to_vmem [thread:$0]  (!%p1727_p11), %s2041_s1, 2048, %s1720_s7, [#allocation8], %s2049_s25, %s2049_s25, %s1624_s6  }
  0x2a   : > { %s1475_s14 = scalar_lea.hbm %s2043_s3, 2048 }
  0x2b   : > { %p1476_p1 = scmp.ne.s32.totalorder %s2043_s3, %s1475_s14  ;;  %p1482_p10 = scmp.lt.u32.totalorder %s1475_s14, %s2043_s3 }
  0x2d   : > { %p1478_p4 = pnand %p1476_p1, %p1449_p13 }
  0x2f   : > { %p1479_p6 = pneg %p1478_p4 }
  0x31   : > { %p1484_p3 = pnand %p1482_p10, %p1479_p6 }
  0x33   : > { %1487 = shalt.err (!%p1484_p3)
}
  0x34   : > { %s1488_s7 = scalar_lea.vmem %s1731_s10, 2048  ;;  %p1496_p12 = scmp.lt.s32.totalorder %s1731_s10, %s1731_s10 }
  0x35   : > { %p1489_p5 = scmp.ne.s32.totalorder %s1731_s10, %s1488_s7  ;;  %p1497_p0 = scmp.lt.s32.totalorder %s1488_s7, %s1488_s7 }
  0x37   : > { %p1491_p7 = pnand %p1489_p5, %p1449_p13  ;;  %p1498_p1 = por %p1497_p0, %p1496_p12 }
  0x39   : > { %p1492_p9 = pneg %p1491_p7 }
  0x3b   : > { %p1499_p4 = pnand %p1498_p1, %p1492_p9 }
  0x3d   : > { %1502 = shalt.err (!%p1499_p4)
}
  0x3e   : > { %1367 = dma.hbm_to_vmem [thread:$0]  (!%p1727_p11), %s2043_s3, 2048, %s1731_s10, [#allocation8], %s2049_s25, %s2049_s25, %s1624_s6  }
  0x3f   : > { %s31_s8 = sadd.s32 1, %s1615_s22  ;;  %s43_s12 = sadd.s32 1, %s1607_s20 }
  0x40   : > { %p32_p13 = scmp.ge.s32.totalorder %s31_s8, 2  ;;  %p50_p6 = scmp.ne.s32.totalorder %s1607_s20, %s1603_s19 }
  0x41   : > { %p51_p10 = scmp.eq.s32.totalorder %s1619_s23, 0  ;;  %p1378_p3 = scmp.lt.s32.totalorder %s1619_s23, 2 }
  0x42   : > { %s2071_s8 = smov (%p32_p13, %s31_s8), 0  ;;  %p1801_p7 = por %p1700_p2, %p50_p6 }
  0x43   : > { %p52_p5 = por %p51_p10, %p50_p6  ;;  %s38_s14 = ssub.s32 %s1615_s22, %s2071_s8 }
  0x44   : > { %s2057_s13 = scalar_select %p1801_p7, 1, 0 }
  0x45   : > { %s233_s15 = sand.u32 1, %s1607_s20   ;;  %p41_p9 = scmp.eq.s32.totalorder %s38_s14, 0 }
  0x46   : > { %s935_s10 = sshll.u32 %s233_s15, 5  ;;  %s953_s16 = sshll.u32 %s1615_s22, 9 }
  0x47   : > { %s1810_s17 = scalar_select %p41_p9, %s1607_s20, %s43_s12  }
  0x48   : > { %s1815_s9 = scalar_lea.hbm %s2040_s0, %s953_s16  ;;  %s237_s27 = scalar_lea.vmem [#allocation4], %s935_s10 }
  0x49   : > { %s245_s11 = sshll.u32 %s237_s27, 4  ;;  %p1819_p2 = pnand %p1378_p3, %p52_p5  ;;  %s1823_s11 = int_to_ptr.vmem [resolvable:$true] %s245_s11 }
  0x4a   : > { %s1825_s12 = scalar_lea.sflag [#allocation5], %s233_s15  ;;  %s1503_s14 = scalar_lea.hbm %s1815_s9, 512 }
  0x4b   : > { %p1504_p11 = scmp.ne.s32.totalorder %s1815_s9, %s1503_s14  ;;  %p1505_p12 = pneg %p1819_p2 }
  0x4c   : > { %s1508_s24 = scalar_lea.hbm %s2040_s0, 1024  ;;  %p1509_p4 = scmp.lt.u32.totalorder %s1815_s9, %s2040_s0 }
  0x4d   : > { %p1506_p0 = pnand %p1505_p12, %p1504_p11  ;;  %p1510_p13 = scmp.lt.u32.totalorder %s1508_s24, %s1503_s14 }
  0x4e   : > { %p1512_p10 = scmp.lt.u32.totalorder %s1503_s14, %s1815_s9 }
  0x4f   : > { %p1507_p1 = pneg %p1506_p0  ;;  %p1511_p6 = por %p1510_p13, %p1509_p4 }
  0x51   : > { %p1513_p3 = por %p1512_p10, %p1511_p6 }
  0x53   : > { %p1514_p5 = pnand %p1513_p3, %p1507_p1 }
  0x55   : > { %1517 = shalt.err (!%p1514_p5)
}
  0x56   : > { %s1518_s15 = scalar_lea.vmem %s1823_s11, 512  ;;  %s1625_s10 = smov [#allocation4]  }
  0x57   : > { %p1519_p9 = scmp.ne.s32.totalorder %s1823_s11, %s1518_s15  ;;  %s1523_s16 = sshll.u32 %s1625_s10, 4  ;;  %s1524_s16 = int_to_ptr.vmem [resolvable:$false] %s1523_s16 }
  0x58   : > { %s1525_s7 = scalar_lea.vmem %s1524_s16, 1024  ;;  %p1526_p7 = scmp.lt.s32.totalorder %s1823_s11, %s1524_s16 }
  0x59   : > { %p1521_p11 = pnand %p1519_p9, %p1505_p12  ;;  %p1527_p4 = scmp.lt.s32.totalorder %s1525_s7, %s1518_s15 }
  0x5b   : > { %p1522_p0 = pneg %p1521_p11  ;;  %p1528_p13 = por %p1527_p4, %p1526_p7 }
  0x5d   : > { %p1529_p6 = pnand %p1528_p13, %p1522_p0 }
  0x5f   : > { %1532 = shalt.err (!%p1529_p6)
}
  0x60   : > { %s2059_s14 = smov 128   ;;  %257 = sbr.rel (%p1716_p8) target bundleno = 1055 (0x41f), region = 40 }
  0x61   : > { %1371 = dma.hbm_to_vmem [thread:$0]  (!%p1819_p2), %s1815_s9, 512, %s1823_s11, %s1825_s12, %s2059_s14, %s2059_s14, %s1624_s6  }
  0x62   : > { %s1859_s24 = sand.u32 (!%p1716_p8), 1, %s1603_s19   ;;  %p2060_p7 = scmp.ne.s32.totalorder (!%p1716_p8), %s2053_s28, 0 }
  0x63   : > { %s939_s27 = sshll.u32 (!%p1716_p8), %s1859_s24, 5  ;;  %s260_s15 = scalar_lea.sflag (!%p1716_p8), [#allocation5], %s1859_s24 }
  0x64   : > { %s1863_s10 = scalar_lea.vmem (!%p1716_p8), [#allocation4], %s939_s27 }
  0x67   : > { %1586 = dma.done.wait (%p2060_p7), %s260_s15, 512  }
  0x68   : > { %1588 = vsyncadd (%p2060_p7), %s260_s15, 4294966784  ;;  %p2061_p2 = scmp.ne.s32.totalorder %s2051_s26, 0 }
  0x6a   : > { %1590 = dma.done.wait (%p2061_p2), [#allocation8], 4096  }
  0x6b   : > { %1592 = vsyncadd (%p2061_p2), [#allocation8], 4294963200  ;;  %s1873_s30 = scalar_lea.vmem [#allocation10], %s939_s27  ;;  %p943_p8 = scmp.ne.s32.totalorder %s1611_s21, 0 }
  0x6c   : > { %v312_v0 = vld [vmem:[%s2044_s4] sm:$0xff] (!%p943_p8) }
  0x6d   : > { %311 = sbr.rel (%p943_p8) target bundleno = 116 (0x74), region = 56  ;;  %313 = vst [vmem:[#allocation2] sm:$0xff] (!%p943_p8), %v312_v0 }
  0x74 PF: > { %v318_v1 = vld [vmem:[#allocation7] sm:$0xff]  ;;  %v319_v2 = vld [vmem:[#allocation7 + $0x8] sm:$0xff]  ;;  %v1626_v5 = vmov 0.0|0.0   ;;  %v320_v7 = vld [vmem:[#allocation7 + $0x10] sm:$0xff]  ;;  %vm1627_vm0 = vmmov 0   ;;  %v1628_v9 = vmov 0.0  }
  0x75   : > { %v432_v3 = vld [vmem:[#allocation9] sm:$0xff]  ;;  %v1221_v4 = vpack.c.bf16 %v319_v2, %v318_v1  ;;  %1253 = vmatprep.subr.bf16.mxu1 %v1626_v5  ;;  %v433_v6 = vld [vmem:[#allocation9 + $0x8] sm:$0xff]  ;;  %v321_v8 = vld [vmem:[#allocation7 + $0x18] sm:$0xff]  ;;  %1113 = vmatprep.mubr.msk.f32.mxu1 %vm1627_vm0, %v1628_v9  ;;  %s954_s9 = sshll.u32 %s1611_s21, 9  ;;  %s809_s11 = sshll.u32 %s1873_s30, 4  ;;  %s1990_s11 = int_to_ptr.vmem [resolvable:$true] %s809_s11 }
  0x76   : > { %v1882_v10 = vpack.c.bf16 %v433_v6, %v432_v3  ;;  %v1225_v11 = vpack.c.bf16 %v321_v8, %v320_v7  ;;  %v434_v12 = vld [vmem:[#allocation9 + $0x10] sm:$0xff]  ;;  %v435_v13 = vld [vmem:[#allocation9 + $0x18] sm:$0xff]  ;;  %v322_v14 = vld [vmem:[#allocation7 + $0x20] sm:$0xff]  ;;  %s1988_s7 = scalar_lea.hbm %s2045_s5, %s954_s9  ;;  %s795_s14 = scalar_lea.sflag [#allocation6], %s1859_s24 }
  0x77   : > { %1222 = vmatprep.subr.bf16.mxu0 %v1221_v4  ;;  %v323_v15 = vld [vmem:[#allocation7 + $0x28] sm:$0xff]  ;;  %v1885_v16 = vpack.c.bf16 %v435_v13, %v434_v12  ;;  %v436_v18 = vld [vmem:[#allocation9 + $0x20] sm:$0xff]  ;;  %v324_v20 = vld [vmem:[#allocation7 + $0x30] sm:$0xff]  ;;  %s1533_s27 = scalar_lea.vmem %s1990_s11, 512  ;;  %p2062_p1 = scmp.ne.s32.totalorder %s2057_s13, 0 }
  0x78   : > { %1224 = vmatpush3.bf16.msra.mxu0 %v1221_v4  ;;  %1255 = vmatpush3.bf16.msra.mxu1 %v1882_v10  ;;  %v1229_v17 = vpack.c.bf16 %v323_v15, %v322_v14  ;;  %v437_v19 = vld [vmem:[#allocation9 + $0x28] sm:$0xff]  ;;  %v325_v21 = vld [vmem:[#allocation7 + $0x38] sm:$0xff]  ;;  %v438_v24 = vld [vmem:[#allocation9 + $0x30] sm:$0xff]  ;;  %p1534_p12 = scmp.ne.s32.totalorder %s1990_s11, %s1533_s27  ;;  %s1629_s15 = smov [#allocation10]  }
  0x79   : > { %1226 = vmatprep.subr.bf16.mxu0 %v1225_v11  ;;  %1256 = vmatprep.subr.bf16.mxu1 %v1626_v5  ;;  %v1889_v22 = vpack.c.bf16 %v437_v19, %v436_v18  ;;  %v1233_v23 = vpack.c.bf16 %v325_v21, %v324_v20  ;;  %v439_v25 = vld [vmem:[#allocation9 + $0x38] sm:$0xff]  ;;  %v326_v26 = vld [vmem:[#allocation7 + $0x40] sm:$0xff]  ;;  %v327_v27 = vld [vmem:[#allocation7 + $0x48] sm:$0xff] }
  0x7a   : > { %v314_v28 = vld [vmem:[%s1863_s10] sm:$0xff]  ;;  %v430_v29 = vld [vmem:[#allocation2] sm:$0xff]  ;;  %v1894_v30 = vpack.c.bf16 %v439_v25, %v438_v24  ;;  %v1237_v31 = vpack.c.bf16 %v327_v27, %v326_v26  ;;  %v441_v33 = vld [vmem:[#allocation9 + $0x48] sm:$0xff]  ;;  %p1535_p10 = pnand %p1534_p12, %p2062_p1 }
  0x7b   : > { %1075 = vmatprep.mubr.f32.mxu0 %v314_v28  ;;  %431 = vst [vmem:[%s1873_s30] sm:$0xff] %v430_v29  ;;  %v440_v32 = vld [vmem:[#allocation9 + $0x40] sm:$0xff]  ;;  %v328_v34 = vld [vmem:[#allocation7 + $0x50] sm:$0xff]  ;;  %v329_v35 = vld [vmem:[#allocation7 + $0x58] sm:$0xff] }
  0x7c   : > { %1228 = vmatpush3.bf16.msra.mxu0 %v1225_v11  ;;  %1258 = vmatpush3.bf16.msra.mxu1 %v1885_v16  ;;  %v1899_v36 = vpack.c.bf16 %v441_v33, %v440_v32  ;;  %v1241_v37 = vpack.c.bf16 %v329_v35, %v328_v34  ;;  %v442_v38 = vld [vmem:[#allocation9 + $0x50] sm:$0xff]  ;;  %v443_v39 = vld [vmem:[#allocation9 + $0x58] sm:$0xff]  ;;  %v330_v40 = vld [vmem:[#allocation7 + $0x60] sm:$0xff]  ;;  %p1536_p3 = pneg %p1535_p10 }
  0x7d   : > { %1230 = vmatprep.subr.bf16.mxu0 %v1229_v17  ;;  %1259 = vmatprep.subr.bf16.mxu1 %v1626_v5  ;;  %v331_v41 = vld [vmem:[#allocation7 + $0x68] sm:$0xff]  ;;  %v1903_v42 = vpack.c.bf16 %v443_v39, %v442_v38  ;;  %v444_v44 = vld [vmem:[#allocation9 + $0x60] sm:$0xff]  ;;  %v332_v46 = vld [vmem:[#allocation7 + $0x70] sm:$0xff] }
  0x7e   : > { %v1245_v43 = vpack.c.bf16 %v331_v41, %v330_v40  ;;  %v445_v45 = vld [vmem:[#allocation9 + $0x68] sm:$0xff]  ;;  %v333_v47 = vld [vmem:[#allocation7 + $0x78] sm:$0xff]  ;;  %v446_v50 = vld [vmem:[#allocation9 + $0x70] sm:$0xff] }
  0x7f   : > { %v1907_v48 = vpack.c.bf16 %v445_v45, %v444_v44  ;;  %v1249_v49 = vpack.c.bf16 %v333_v47, %v332_v46  ;;  %v447_v51 = vld [vmem:[#allocation9 + $0x78] sm:$0xff]  ;;  %v315_v53 = vld [vmem:[%s1863_s10 + $0x8] sm:$0xff]  ;;  %v316_v54 = vld [vmem:[%s1863_s10 + $0x10] sm:$0xff] }
  0x80   : > { %1232 = vmatpush3.bf16.msra.mxu0 %v1229_v17  ;;  %1261 = vmatpush3.bf16.msra.mxu1 %v1889_v22  ;;  %v1911_v52 = vpack.c.bf16 %v447_v51, %v446_v50  ;;  %v317_v55 = vld [vmem:[%s1863_s10 + $0x18] sm:$0xff]  ;;  %s1537_s10 = sshll.u32 %s1629_s15, 4  ;;  %s1538_s10 = int_to_ptr.vmem [resolvable:$false] %s1537_s10 }
  0x81   : > { %1234 = vmatprep.subr.bf16.mxu0 %v1233_v23  ;;  %1262 = vmatprep.subr.bf16.mxu1 %v1626_v5  ;;  %v1958_v56 = vld [vmem:[%s2042_s2] ss:$0 sm:$0xff]  ;;  %s1539_s21 = scalar_lea.vmem %s1538_s10, 1024  ;;  %p1540_p5 = scmp.lt.s32.totalorder %s1990_s11, %s1538_s10 }
  0x82   : > { %p1541_p9 = scmp.lt.s32.totalorder %s1539_s21, %s1533_s27 }
  0x84   : > { %1236 = vmatpush3.bf16.msra.mxu0 %v1233_v23  ;;  %1264 = vmatpush3.bf16.msra.mxu1 %v1894_v30  ;;  %p1542_p11 = por %p1541_p9, %p1540_p5 }
  0x85   : > { %1238 = vmatprep.subr.bf16.mxu0 %v1237_v31  ;;  %1265 = vmatprep.subr.bf16.mxu1 %v1626_v5 }
  0x86   : > { %p1543_p0 = pnand %p1542_p11, %p1536_p3 }
  0x88   : > { %1240 = vmatpush3.bf16.msra.mxu0 %v1237_v31  ;;  %1267 = vmatpush3.bf16.msra.mxu1 %v1899_v36 }
  0x89   : > { %1242 = vmatprep.subr.bf16.mxu0 %v1241_v37  ;;  %1268 = vmatprep.subr.bf16.mxu1 %v1626_v5 }
  0x8c   : > { %1244 = vmatpush3.bf16.msra.mxu0 %v1241_v37  ;;  %1270 = vmatpush3.bf16.msra.mxu1 %v1903_v42 }
  0x8d   : > { %1246 = vmatprep.subr.bf16.mxu0 %v1245_v43  ;;  %1271 = vmatprep.subr.bf16.mxu1 %v1626_v5 }
  0x90   : > { %1248 = vmatpush3.bf16.msra.mxu0 %v1245_v43  ;;  %1273 = vmatpush3.bf16.msra.mxu1 %v1907_v48 }
  0x91   : > { %1250 = vmatprep.subr.bf16.mxu0 %v1249_v49  ;;  %1274 = vmatprep.subr.bf16.mxu1 %v1626_v5 }
  0x94   : > { %1252 = vmatpush3.bf16.msra.mxu0 %v1249_v49  ;;  %1276 = vmatpush3.bf16.msra.mxu1 %v1911_v52 }
  0x95   : > { %1277 = vmatprep.subr.bf16.mxu0 %v1626_v5  ;;  %1301 = vmatprep.subr.bf16.mxu1 %v1626_v5 }
  0x97   : > { %1076 = vmatmul.mubr.f32.vlgmr.msra.gmra.mrb[0].mxu0 %v315_v53  ;;  %1114 = vmatmul.mubr.f32.vlgmr.msra.gmra.mrb[0].mxu1 %v430_v29 }
  0x98   : > { %1279 = vmatpush3.bf16.msra.mxu0 %v1882_v10  ;;  %1303 = vmatpush3.bf16.msra.mxu1 %v1882_v10 }
  0x99   : > { %1280 = vmatprep.subr.bf16.mxu0 %v1626_v5  ;;  %1304 = vmatprep.subr.bf16.mxu1 %v1626_v5 }
  0x9a   : > { %1183 = vmatprep.mubr.msk.f32.mxu1 %vm1627_vm0, %v1628_v9  ;;  %1078 = vmatprep.mubr.f32.mxu0 %v316_v54 }
  0x9b   : > { %1079 = vmatmul.mubr.f32.gmra.mrb[2].mxu0 %v317_v55 }
  0x9c   : > { %1282 = vmatpush3.bf16.msra.mxu0 %v1885_v16  ;;  %1306 = vmatpush3.bf16.msra.mxu1 %v1885_v16 }
  0x9d   : > { %1283 = vmatprep.subr.bf16.mxu0 %v1626_v5  ;;  %1307 = vmatprep.subr.bf16.mxu1 %v1626_v5 }
  0x9e   : > { %1148 = vmatprep.mubr.msk.f32.mxu0 %vm1627_vm0, %v1628_v9 }
  0xa0   : > { %1285 = vmatpush3.bf16.msra.mxu0 %v1889_v22  ;;  %1309 = vmatpush3.bf16.msra.mxu1 %v1889_v22 }
  0xa1   : > { %1286 = vmatprep.subr.bf16.mxu0 %v1626_v5  ;;  %1310 = vmatprep.subr.bf16.mxu1 %v1626_v5 }
  0xa4   : > { %1288 = vmatpush3.bf16.msra.mxu0 %v1894_v30  ;;  %1312 = vmatpush3.bf16.msra.mxu1 %v1894_v30 }
  0xa5   : > { %1289 = vmatprep.subr.bf16.mxu0 %v1626_v5  ;;  %1313 = vmatprep.subr.bf16.mxu1 %v1626_v5 }
  0xa8   : > { %1291 = vmatpush3.bf16.msra.mxu0 %v1899_v36  ;;  %1315 = vmatpush3.bf16.msra.mxu1 %v1899_v36 }
  0xa9   : > { %1292 = vmatprep.subr.bf16.mxu0 %v1626_v5  ;;  %1316 = vmatprep.subr.bf16.mxu1 %v1626_v5 }
  0xac   : > { %1294 = vmatpush3.bf16.msra.mxu0 %v1903_v42  ;;  %1318 = vmatpush3.bf16.msra.mxu1 %v1903_v42 }
  0xad   : > { %1295 = vmatprep.subr.bf16.mxu0 %v1626_v5  ;;  %1319 = vmatprep.subr.bf16.mxu1 %v1626_v5 }
  0xb0   : > { %1297 = vmatpush3.bf16.msra.mxu0 %v1907_v48  ;;  %1321 = vmatpush3.bf16.msra.mxu1 %v1907_v48 }
  0xb1   : > { %1298 = vmatprep.subr.bf16.mxu0 %v1626_v5  ;;  %1322 = vmatprep.subr.bf16.mxu1 %v1626_v5 }
  0xb4   : > { %1300 = vmatpush3.bf16.msra.mxu0 %v1911_v52  ;;  %1324 = vmatpush3.bf16.msra.mxu1 %v1911_v52 }
  0xb5   : > { %1325 = vmatprep.subr.bf16.mxu0 %v1626_v5 }
 0x16a   : > { %v1077_v57 = vpop.f32.mrb[0].mxu0  ;;  %v515_v58 = vpop.f32.mrb[0].mxu1 }
 0x16b   : > { %v407_v59 = vpop.f32.mrb[1].mxu0  ;;  %v1115_v60 = vpop.f32.mrb[1].mxu1  ;;  %v413_v2 = vadd.f32 %v1077_v57, %v1958_v56 }
 0x16c   : > { %v408_v61 = vadd.f32 %v1958_v56, %v407_v59 }
 0x16e   : > { %v516_v62 = vadd.f32 %v515_v58, %v408_v61  ;;  %v1080_v0 = vpop.f32.mrb[2].mxu0 }
 0x16f   : > { %v417_v1 = vpop.f32.mrb[3].mxu0 }
 0x170   : > { %1439 = vtanh.f32 %v516_v62 }
 0x17a   : > { %v1440_v63 = vpop.eup %1439 }
 0x17b   : > { %945 = vst [vmem:[%s1873_s30 + $0x8] sm:$0xff] %v1440_v63  ;;  %1149 = vmatmul.mubr.f32.vlgmr.msra.gmra.mrb[4].mxu0 %v1440_v63 }
 0x17c   : > { %1327 = vmatpush3.bf16.msra.mxu0 %v1882_v10  ;;  %1218 = vmatprep.mubr.msk.f32.mxu0 %vm1627_vm0, %v1628_v9 }
 0x17d   : > { %1328 = vmatprep.subr.bf16.mxu0 %v1626_v5 }
 0x180   : > { %1330 = vmatpush3.bf16.msra.mxu0 %v1885_v16 }
 0x181   : > { %1331 = vmatprep.subr.bf16.mxu0 %v1626_v5 }
 0x184   : > { %1333 = vmatpush3.bf16.msra.mxu0 %v1889_v22 }
 0x185   : > { %1334 = vmatprep.subr.bf16.mxu0 %v1626_v5 }
 0x188   : > { %1336 = vmatpush3.bf16.msra.mxu0 %v1894_v30 }
 0x189   : > { %1337 = vmatprep.subr.bf16.mxu0 %v1626_v5 }
 0x18c   : > { %1339 = vmatpush3.bf16.msra.mxu0 %v1899_v36 }
 0x18d   : > { %1340 = vmatprep.subr.bf16.mxu0 %v1626_v5 }
 0x190   : > { %1342 = vmatpush3.bf16.msra.mxu0 %v1903_v42 }
 0x191   : > { %1343 = vmatprep.subr.bf16.mxu0 %v1626_v5 }
 0x194   : > { %1345 = vmatpush3.bf16.msra.mxu0 %v1907_v48 }
 0x195   : > { %1346 = vmatprep.subr.bf16.mxu0 %v1626_v5  ;;  %v418_v5 = vadd.f32 %v1958_v56, %v417_v1 }
 0x198   : > { %1348 = vmatpush3.bf16.msra.mxu0 %v1911_v52 }
 0x24e   : > { %v606_v3 = vpop.f32.mrb[4].mxu0 }
 0x24f   : > { %v607_v4 = vadd.f32 %v606_v3, %v413_v2  ;;  %v1150_v6 = vpop.f32.mrb[5].mxu0 }
 0x251   : > { %1441 = vtanh.f32 %v607_v4 }
 0x25b   : > { %v1442_v7 = vpop.eup %1441 }
 0x25c   : > { %946 = vst [vmem:[%s1873_s30 + $0x10] sm:$0xff] %v1442_v7  ;;  %1184 = vmatmul.mubr.f32.vlgmr.msra.gmra.mrb[2].mxu1 %v1442_v7 }
 0x32f   : > { %v697_v8 = vpop.f32.mrb[2].mxu1 }
 0x330   : > { %v698_v9 = vadd.f32 %v697_v8, %v418_v5  ;;  %v1185_v10 = vpop.f32.mrb[3].mxu1 }
 0x332   : > { %1443 = vtanh.f32 %v698_v9 }
 0x33c   : > { %v1444_v11 = vpop.eup %1443 }
 0x33d   : > { %947 = vst [vmem:[%s1873_s30 + $0x18] sm:$0xff] %v1444_v11  ;;  %1219 = vmatmul.mubr.f32.vlgmr.msra.gmra.mrb[6].mxu0 %v1444_v11 }
 0x33e   : > { %1546 = shalt.err (!%p1543_p0)
}
 0x33f   : > { %s1547_s30 = scalar_lea.hbm %s1988_s7, 512  ;;  %s1551_s26 = scalar_lea.hbm %s2045_s5, 1024 }
 0x340   : > { %p1548_p4 = scmp.ne.s32.totalorder %s1988_s7, %s1547_s30  ;;  %p1552_p7 = scmp.lt.u32.totalorder %s1988_s7, %s2045_s5 }
 0x341   : > { %p1553_p2 = scmp.lt.u32.totalorder %s1551_s26, %s1547_s30  ;;  %p1555_p12 = scmp.lt.u32.totalorder %s1547_s30, %s1988_s7 }
 0x342   : > { %p1549_p13 = pnand %p1548_p4, %p2062_p1 }
 0x343   : > { %p1554_p8 = por %p1553_p2, %p1552_p7 }
 0x344   : > { %p1550_p6 = pneg %p1549_p13 }
 0x345   : > { %p1556_p10 = por %p1555_p12, %p1554_p8 }
 0x347   : > { %p1557_p3 = pnand %p1556_p10, %p1550_p6 }
 0x349   : > { %1560 = shalt.err (!%p1557_p3)
}
 0x34a   : > { %s1630_s12 = smov 128   ;;  %s1631_s16 = smov 8   ;;  %v423_v12 = vadd.f32 %v1080_v0, %v1958_v56 }
 0x34b   : > { %1359 = dma.vmem_to_hbm [thread:$0]  (%p2062_p1), %s1990_s11, 512, %s1988_s7, %s795_s14, %s1630_s12, %s1630_s12, %s1631_s16  }
 0x410   : > { %v788_v13 = vpop.f32.mrb[6].mxu0 }
 0x411   : > { %v789_v14 = vadd.f32 %v788_v13, %v423_v12  ;;  %v1220_v15 = vpop.f32.mrb[7].mxu0 }
 0x413   : > { %1445 = vtanh.f32 %v789_v14 }
 0x41d   : > { %v1446_v16 = vpop.eup %1445 }
 0x41e   : > { %793 = vst [vmem:[#allocation2] sm:$0xff] %v1446_v16 }
 0x41f PF: > { %s824_s27 = sand.u32 1, %s1599_s18   ;;  %p2063_p5 = scmp.ne.s32.totalorder %s2054_s29, 0 }
 0x420   : > { %p2064_p9 = scmp.ge.s32.totalorder %s1619_s23, 2  ;;  %s825_s15 = scalar_lea.sflag [#allocation6], %s824_s27 }
 0x422   : > { %p1373_p11 = pnand %p2064_p9, %p2063_p5 }
 0x424   : > { %1594 = dma.done.wait (!%p1373_p11), %s825_s15, 512  }
 0x425   : > { %1596 = vsyncadd (!%p1373_p11), %s825_s15, 4294966784  ;;  %s22_s23 = sadd.s32 1, %s1619_s23   ;;  %s2065_s18 = smov %s1603_s19 }
 0x426   : > { %p19_p1 = scmp.ge.s32.totalorder %s22_s23, 4   ;;  %s2066_s19 = smov %s1607_s20 }
 0x427   : > { %s2067_s20 = smov %s1810_s17  ;;  %s2068_s21 = smov %s1615_s22 }
 0x428   : > { %s2069_s22 = smov %s2071_s8  ;;  %21 = sbr.rel (!%p19_p1) target bundleno = 7 (0x7), region = 106 }
 0x42f   :  { %830 = vsyncpa [#allocation5], 1 }
 0x430   :  { %832 = vsyncpa [#allocation5 + $0x1], 1 }
 0x431   :  { %833 = vsyncpa [#allocation8], 1 }
 0x432   :  { %834 = vsyncpa [#allocation6], 1 }
 0x433   :  { %836 = vsyncpa [#allocation6 + $0x1], 1 }

</bundles_post_ra>
